<compile_context>
chip_gen: v7x
topology: tpu7x:2x2x1
jax: 0.10.0
libtpu: 0.0.40
codegen_flags: <defaults>
</compile_context>

<pallas_src>
import functools

import jax
import jax.numpy as jnp
from jax.experimental import pallas as pl
from jax.experimental.pallas import tpu as pltpu


def _layernorm_kernel(x_ref, gamma_ref, beta_ref, o_ref, *, eps, dim):
    # One block = (block_rows, D). Reductions along the last (lane) axis go to the XLU.
    x = x_ref[...].astype(jnp.float32)                          # (bm, D)
    mean = jnp.sum(x, axis=-1, keepdims=True) * (1.0 / dim)     # (bm, 1)
    centered = x - mean                                         # (bm, D), VMEM-resident
    # Unbiased variance (ddof=1), matching torch.Tensor.var() used by the module.
    # (For dim == 1 torch would produce NaN; we divide by 1 instead to avoid a 0-div.)
    denom = dim - 1 if dim > 1 else 1
    var = jnp.sum(centered * centered, axis=-1, keepdims=True) * (1.0 / denom)
    inv = jax.lax.rsqrt(var + eps)                              # EUP op, off the VPU path
    gamma = gamma_ref[...].astype(jnp.float32)                  # (1, D)
    beta = beta_ref[...].astype(jnp.float32)                    # (1, D)
    o_ref[...] = (centered * inv * gamma + beta).astype(o_ref.dtype)


def _sublane_multiple(itemsize):
    # Packed-sublane minimum: f32 -> 8, bf16/f16 -> 16, int8/fp8 -> 32.
    return {4: 8, 2: 16, 1: 32}.get(itemsize, 8)


def _cdiv(a, b):
    return -(-a // b)


def _round_up(x, m):
    return _cdiv(x, m) * m


def _choose_block_rows(R, D, itemsize):
    """Pick block_rows targeting ~2 MiB of HBM traffic per block, >= 2 grid steps
    (pipelining / megacore) and an even step count when cheap to arrange."""
    sub = _sublane_multiple(itemsize)
    target_bytes = 2 << 20  # 1-4 MiB plateau; 2 MiB keeps v7x (64 MiB VMEM) comfortable.
    rows_target = max((target_bytes // (D * itemsize)) // sub * sub, sub)

    if R <= 2 * sub:
        # Too small to split: one full-extent block (always a legal block dim).
        return R

    if R <= rows_target:
        # Medium input: 2 blocks instead of 1 so DMA-in(i+1) / compute(i) / DMA-out(i-1)
        # overlap, and the 'parallel' row axis can use both v7x TensorCores.
        return min(_round_up(_cdiv(R, 2), sub), R)

    br = rows_target
    nsteps = _cdiv(R, br)
    if nsteps % 2 == 1 and nsteps >= 3:
        # Best-effort even step count (v7x megacore balance); keeps block near target.
        br2 = _round_up(_cdiv(R, nsteps + 1), sub)
        if br2 >= sub and _cdiv(R, br2) % 2 == 0:
            br = br2
    return br


def layer_norm(x, gamma, beta, *, eps=1e-5, block_rows=None):
    """x: (..., D) array. gamma, beta: (D,). Returns same shape/dtype as x."""
    orig_shape = x.shape
    D = orig_shape[-1]
    x2 = x.reshape(-1, D)
    R = x2.shape[0]

    itemsize = jnp.dtype(x.dtype).itemsize
    if block_rows is None:
        block_rows = _choose_block_rows(R, D, itemsize)
    block_rows = int(min(block_rows, R))

    gamma2 = gamma.reshape(1, D)
    beta2 = beta.reshape(1, D)

    # No host-side padding: ragged last block is masked by Pallas.
    grid = (_cdiv(R, block_rows),)

    # Explicit VMEM budget: double-buffered in/out blocks + f32 temporaries + params.
    blk_elems = block_rows * D
    vmem_est = (2 * blk_elems * itemsize        # input blocks (double-buffered)
                + 2 * blk_elems * itemsize      # output blocks (double-buffered)
                + 3 * blk_elems * 4             # in-kernel f32 working set (x, centered, out)
                + 4 * D * 4)                    # gamma/beta
    # 2x headroom, at least 16 MiB; capped at v7x's 64 MiB physical VMEM.
    vmem_limit = int(min(max(2 * vmem_est, 16 << 20), 64 << 20))

    kernel = functools.partial(_layernorm_kernel, eps=float(eps), dim=int(D))

    out = pl.pallas_call(
        kernel,
        out_shape=jax.ShapeDtypeStruct((R, D), x.dtype),
        grid_spec=pltpu.PrefetchScalarGridSpec(
            num_scalar_prefetch=0,
            grid=grid,
            in_specs=[
                pl.BlockSpec((block_rows, D), lambda i: (i, 0)),
                pl.BlockSpec((1, D), lambda i: (0, 0)),
                pl.BlockSpec((1, D), lambda i: (0, 0)),
            ],
            out_specs=pl.BlockSpec((block_rows, D), lambda i: (i, 0)),
        ),
        compiler_params=pltpu.CompilerParams(
            dimension_semantics=("parallel",),
            vmem_limit_bytes=vmem_limit,
        ),
    )(x2, gamma2, beta2)

    return out.reshape(orig_shape)


def _reference(x, gamma, beta, eps=1e-5):
    x32 = x.astype(jnp.float32)
    mean = jnp.mean(x32, axis=-1, keepdims=True)
    var = jnp.var(x32, axis=-1, keepdims=True, ddof=1)  # unbiased, like torch.Tensor.var
    xhat = (x32 - mean) / jnp.sqrt(var + eps)
    return (gamma * xhat + beta).astype(x.dtype)


if __name__ == "__main__":
    key = jax.random.PRNGKey(0)
    # DETR-style usage: (batch, seq, hidden). hidden=256 matches the DETR model dim
    # and keeps the normalized axis lane-dense (multiple of 128).
    B, S, H = 2, 8, 256
    x = jax.random.normal(key, (B, S, H), dtype=jnp.float32)

    # nn.Parameter defaults from __init__: gamma = ones(dim), beta = zeros(dim).
    gamma = jnp.ones((H,), dtype=jnp.float32)
    beta = jnp.zeros((H,), dtype=jnp.float32)

    out = layer_norm(x, gamma, beta, eps=1e-5)
    out = jax.block_until_ready(out)

    ref = _reference(x, gamma, beta, eps=1e-5)
    assert out.shape == x.shape
    assert jnp.max(jnp.abs(out - ref)) < 1e-4

    # Ragged-grid (R not a multiple of block_rows) and small-D path.
    x2 = jax.random.normal(jax.random.PRNGKey(1), (3, 7, 32), dtype=jnp.float32)
    g2 = jnp.full((32,), 1.5, dtype=jnp.float32)
    b2 = jnp.full((32,), -0.25, dtype=jnp.float32)
    o2 = jax.block_until_ready(layer_norm(x2, g2, b2, eps=1e-5, block_rows=8))
    assert o2.shape == x2.shape
    assert jnp.max(jnp.abs(o2 - _reference(x2, g2, b2, eps=1e-5))) < 1e-4

    # Auto block-size path on a non-trivial row count (exercises multi-step grid + bf16
    # byte-based tiling) while staying small.
    x3 = jax.random.normal(jax.random.PRNGKey(2), (4, 37, 256), dtype=jnp.bfloat16)
    g3 = jnp.ones((256,), dtype=jnp.float32)
    b3 = jnp.zeros((256,), dtype=jnp.float32)
    o3 = jax.block_until_ready(layer_norm(x3, g3, b3, eps=1e-5))
    assert o3.shape == x3.shape
    assert jnp.max(jnp.abs(o3.astype(jnp.float32)
                           - _reference(x3, g3, b3, eps=1e-5).astype(jnp.float32))) < 5e-2

    print("KERNEL_OK")
</pallas_src>

<mosaic_0001>
module attributes {stable_mosaic.version = 11 : i64} {
  func.func @_layernorm_kernel(%arg0: i32, %arg1: memref<16x256xf32, #tpu.memory_space<vmem>>, %arg2: memref<1x256xf32, #tpu.memory_space<vmem>>, %arg3: memref<1x256xf32, #tpu.memory_space<vmem>>, %arg4: memref<16x256xf32, #tpu.memory_space<vmem>>) attributes {dimension_semantics = [#tpu.dimension_semantics<parallel>], iteration_bounds = array<i64: 1>, scalar_prefetch = 0 : i64, scratch_operands = 0 : i64, tpu.core_type = #tpu.core_type<tc>, window_params = [{transform_indices = @transform_0, window_bounds = array<i64: 16, 256>}, {pipeline_mode = #tpu.pipeline_mode<synchronous>, transform_indices = @transform_1, window_bounds = array<i64: 1, 256>}, {pipeline_mode = #tpu.pipeline_mode<synchronous>, transform_indices = @transform_2, window_bounds = array<i64: 1, 256>}, {transform_indices = @transform_3, window_bounds = array<i64: 16, 256>}]} {
    %c0 = arith.constant 0 : index
    %c0_0 = arith.constant 0 : index
    %0 = vector.load %arg1[%c0, %c0_0] : memref<16x256xf32, #tpu.memory_space<vmem>>, vector<16x256xf32>
    %cst = arith.constant dense<0.000000e+00> : vector<16xf32>
    %1 = vector.multi_reduction <add>, %0, %cst [1] : vector<16x256xf32> to vector<16xf32>
    %2 = vector.shape_cast %1 : vector<16xf32> to vector<16x1xf32>
    %cst_1 = arith.constant 3.906250e-03 : f32
    %3 = vector.broadcast %cst_1 : f32 to vector<16x1xf32>
    %4 = arith.mulf %2, %3 : vector<16x1xf32>
    %5 = vector.broadcast %4 : vector<16x1xf32> to vector<16x256xf32>
    %6 = arith.subf %0, %5 : vector<16x256xf32>
    %7 = arith.mulf %6, %6 : vector<16x256xf32>
    %cst_2 = arith.constant dense<0.000000e+00> : vector<16xf32>
    %8 = vector.multi_reduction <add>, %7, %cst_2 [1] : vector<16x256xf32> to vector<16xf32>
    %9 = vector.shape_cast %8 : vector<16xf32> to vector<16x1xf32>
    %cst_3 = arith.constant 0.00392156886 : f32
    %10 = vector.broadcast %cst_3 : f32 to vector<16x1xf32>
    %11 = arith.mulf %9, %10 : vector<16x1xf32>
    %cst_4 = arith.constant 9.99999974E-6 : f32
    %12 = vector.broadcast %cst_4 : f32 to vector<16x1xf32>
    %13 = arith.addf %11, %12 : vector<16x1xf32>
    %14 = math.rsqrt %13 : vector<16x1xf32>
    %c0_5 = arith.constant 0 : index
    %c0_6 = arith.constant 0 : index
    %15 = vector.load %arg2[%c0_5, %c0_6] : memref<1x256xf32, #tpu.memory_space<vmem>>, vector<1x256xf32>
    %c0_7 = arith.constant 0 : index
    %c0_8 = arith.constant 0 : index
    %16 = vector.load %arg3[%c0_7, %c0_8] : memref<1x256xf32, #tpu.memory_space<vmem>>, vector<1x256xf32>
    %17 = vector.broadcast %14 : vector<16x1xf32> to vector<16x256xf32>
    %18 = arith.mulf %6, %17 : vector<16x256xf32>
    %19 = vector.broadcast %15 : vector<1x256xf32> to vector<16x256xf32>
    %20 = arith.mulf %18, %19 : vector<16x256xf32>
    %21 = vector.broadcast %16 : vector<1x256xf32> to vector<16x256xf32>
    %22 = arith.addf %20, %21 : vector<16x256xf32>
    %c0_9 = arith.constant 0 : index
    %c0_10 = arith.constant 0 : index
    %23 = vector.load %arg4[%c0_9, %c0_10] : memref<16x256xf32, #tpu.memory_space<vmem>>, vector<16x256xf32>
    tpu.vector_store %arg4[%c0_9, %c0_10], %22 {strides = array<i32>} : memref<16x256xf32, #tpu.memory_space<vmem>>, vector<16x256xf32>,
    return
  }
  func.func @transform_0(%arg0: i32) -> (i32, i32) {
    %c0_i32 = arith.constant 0 : i32
    %c0_i32_0 = arith.constant 0 : i32
    return %arg0, %c0_i32 : i32, i32
  }
  func.func @transform_1(%arg0: i32) -> (i32, i32) {
    %c0_i32 = arith.constant 0 : i32
    %c0_i32_0 = arith.constant 0 : i32
    %c0_i32_1 = arith.constant 0 : i32
    return %c0_i32, %c0_i32_0 : i32, i32
  }
  func.func @transform_2(%arg0: i32) -> (i32, i32) {
    %c0_i32 = arith.constant 0 : i32
    %c0_i32_0 = arith.constant 0 : i32
    %c0_i32_1 = arith.constant 0 : i32
    return %c0_i32, %c0_i32_0 : i32, i32
  }
  func.func @transform_3(%arg0: i32) -> (i32, i32) {
    %c0_i32 = arith.constant 0 : i32
    %c0_i32_0 = arith.constant 0 : i32
    return %arg0, %c0_i32 : i32, i32
  }
}

</mosaic_0001>

<bundles_post_ra>
// kernel: tpu_custom_call.1
= control target key start
LH: loop header
LB: loop body
LE: loop exit
PB: predicated region body
PF: predicated region fallthrough
CT: control target
= control target key end

     0   :  { %8 = vsyncpa [#allocation3], 0  ;;  %s234_s0 = inlined_call_operand.hbm [shape: f32[16,256], index: 0, kind: input, shape index: {}]   ;;  %s235_s1 = inlined_call_operand.vmem [shape: f32[1,256], index: 1, kind: input, shape index: {}]   ;;  %s236_s2 = inlined_call_operand.vmem [shape: f32[1,256], index: 2, kind: input, shape index: {}]   ;;  %s237_s3 = inlined_call_operand.hbm [shape: f32[16,256], index: 3, kind: output, shape index: {}]  }
   0x1   :  { %9 = vsyncpa [#allocation4], 0  ;;  %s174_s12 = smov [#allocation2]   ;;  %s126_s16 = scalar_lea.hbm %s234_s0, 512 }
   0x2   :  { %s15_s13 = sshll.u32 %s174_s12, 4  ;;  %p127_p0 = scmp.ne.s32.totalorder %s234_s0, %s126_s16  ;;  %s16_s13 = int_to_ptr.vmem [resolvable:$true] %s15_s13 }
   0x3   :  { %p130_p1 = scmp.lt.u32.totalorder %s126_s16, %s234_s0 }
   0x5   :  { %p132_p2 = pnand %p130_p1, %p127_p0 }
   0x7   :  { %135 = shalt.err (!%p132_p2)
}
   0x8   :  { %s136_s21 = scalar_lea.vmem %s16_s13, 512  ;;  %p141_p4 = scmp.lt.s32.totalorder %s16_s13, %s16_s13 }
   0x9   :  { %p137_p3 = scmp.ne.s32.totalorder %s16_s13, %s136_s21  ;;  %p142_p5 = scmp.lt.s32.totalorder %s136_s21, %s136_s21 }
   0xb   :  { %p143_p6 = por %p142_p5, %p141_p4 }
   0xd   :  { %p144_p7 = pnand %p143_p6, %p137_p3 }
   0xf   :  { %147 = shalt.err (!%p144_p7)
}
  0x10   :  { %s175_s22 = smov 256   ;;  %s176_s23 = smov 16  }
  0x11   :  { %21 = dma.hbm_to_vmem [thread:$0]  %s234_s0, 512, %s16_s13, [#allocation3], %s175_s22, %s175_s22, %s176_s23  }
  0x12   :  { %170 = dma.done.wait [#allocation3], 512  }
  0x13   :  { %171 = vsyncadd [#allocation3], 4294966784  ;;  %v29_v0 = vld [vmem:[#allocation2] sm:$0xff]  ;;  %v30_v1 = vld [vmem:[#allocation2 + $0x8] sm:$0xff]  ;;  %v68_v22 = vlaneseq  ;;  %s177_s29 = smov [#allocation5]  }
  0x14   :  { %v31_v2 = vld [vmem:[#allocation2 + $0x10] sm:$0xff]  ;;  %v33_v3 = vadd.f32 %v30_v1, %v29_v0  ;;  %v32_v4 = vld [vmem:[#allocation2 + $0x18] sm:$0xff]  ;;  %v61_v30 = vld [vmem:[%s235_s1] sm:$0x3]  ;;  %s106_s1 = sshll.u32 %s177_s29, 4  ;;  %s107_s1 = int_to_ptr.vmem [resolvable:$true] %s106_s1 }
  0x15   :  { %v36_v5 = vadd.f32 %v32_v4, %v31_v2  ;;  %v69_v26 = vshrl.u32 %v68_v22, 7  ;;  %v62_v31 = vld [vmem:[%s236_s2] sm:$0x3]  ;;  %s148_s2 = scalar_lea.vmem %s107_s1, 512  ;;  %p153_p9 = scmp.lt.s32.totalorder %s107_s1, %s107_s1 }
  0x16   :  { %34 = vadd.xlane.f32.xlu0 %v33_v3  ;;  %p149_p8 = scmp.ne.s32.totalorder %s107_s1, %s148_s2  ;;  %p154_p10 = scmp.lt.s32.totalorder %s148_s2, %s148_s2 }
  0x17   :  { %v70_v28 = vsub.s32 0, %v69_v26  ;;  %v74_v29 = vsub.s32 1, %v69_v26 }
  0x18   :  { %p155_p11 = por %p154_p10, %p153_p9 }
  0x19   :  { %v71_v32 = vrot.slane %v61_v30, %v70_v28  ;;  %v75_v33 = vrot.slane %v61_v30, %v74_v29  ;;  %v86_v37 = vrot.slane %v62_v31, %v70_v28  ;;  %v90_v38 = vrot.slane %v62_v31, %v74_v29 }
  0x1a   :  { %37 = vadd.xlane.f32.xlu0 %v36_v5  ;;  %p156_p12 = pnand %p155_p11, %p149_p8 }
  0xa3   :  { %v35_v6 = vpop.xlane.xlu0 %34 }
  0xa4   :  { %v39_v7 = vmul.f32 0.00390625, %v35_v6 }
  0xa6   :  { %v41_v8 = vsub.f32 %v29_v0, %v39_v7  ;;  %v42_v9 = vsub.f32 %v30_v1, %v39_v7 }
  0xa7   :  { %v38_v10 = vpop.xlane.xlu0 %37 }
  0xa8   :  { %v40_v11 = vmul.f32 0.00390625, %v38_v10  ;;  %v45_v12 = vmul.f32 %v41_v8, %v41_v8  ;;  %v46_v13 = vmul.f32 %v42_v9, %v42_v9 }
  0xaa   :  { %v43_v14 = vsub.f32 %v31_v2, %v40_v11  ;;  %v44_v15 = vsub.f32 %v32_v4, %v40_v11  ;;  %v49_v16 = vadd.f32 %v46_v13, %v45_v12 }
  0xac   :  { %50 = vadd.xlane.f32.xlu1 %v49_v16  ;;  %v47_v17 = vmul.f32 %v43_v14, %v43_v14  ;;  %v48_v18 = vmul.f32 %v44_v15, %v44_v15 }
  0xae   :  { %v52_v19 = vadd.f32 %v48_v18, %v47_v17 }
  0xb0   :  { %53 = vadd.xlane.f32.xlu1 %v52_v19 }
 0x139   :  { %v51_v20 = vpop.xlane.xlu1 %50 }
 0x13a   :  { %v55_v21 = vmul.f32 0.003921569, %v51_v20 }
 0x13c   :  { %v57_v23 = vadd.f32 1e-05, %v55_v21 }
 0x13d   :  { %v54_v24 = vpop.xlane.xlu1 %53 }
 0x13e   :  { %122 = vrsqrt.f32 %v57_v23  ;;  %v56_v25 = vmul.f32 0.003921569, %v54_v24 }
 0x140   :  { %v58_v27 = vadd.f32 1e-05, %v56_v25 }
 0x142   :  { %124 = vrsqrt.f32 %v58_v27 }
 0x148   :  { %v123_v34 = vpop.eup %122 }
 0x149   :  { %v63_v35 = vmul.f32 %v123_v34, %v41_v8  ;;  %v64_v36 = vmul.f32 %v123_v34, %v42_v9 }
 0x14b   :  { %v78_v39 = vmul.f32 %v71_v32, %v63_v35  ;;  %v79_v40 = vmul.f32 %v75_v33, %v64_v36 }
 0x14c   :  { %v125_v41 = vpop.eup %124 }
 0x14d   :  { %v65_v42 = vmul.f32 %v125_v41, %v43_v14  ;;  %v66_v43 = vmul.f32 %v125_v41, %v44_v15  ;;  %v93_v44 = vadd.f32 %v86_v37, %v78_v39  ;;  %v94_v45 = vadd.f32 %v90_v38, %v79_v40 }
 0x14f   :  { %v80_v46 = vmul.f32 %v71_v32, %v65_v42  ;;  %v81_v47 = vmul.f32 %v75_v33, %v66_v43  ;;  %97 = vst [vmem:[#allocation5] sm:$0xff] %v93_v44  ;;  %98 = vst [vmem:[#allocation5 + $0x8] sm:$0xff] %v94_v45 }
 0x151   :  { %v95_v48 = vadd.f32 %v86_v37, %v80_v46  ;;  %v96_v49 = vadd.f32 %v90_v38, %v81_v47 }
 0x153   :  { %99 = vst [vmem:[#allocation5 + $0x10] sm:$0xff] %v95_v48  ;;  %100 = vst [vmem:[#allocation5 + $0x18] sm:$0xff] %v96_v49 }
 0x154   :  { %159 = shalt.err (!%p156_p12)
}
 0x155   :  { %s160_s5 = scalar_lea.hbm %s237_s3, 512 }
 0x156   :  { %p161_p13 = scmp.ne.s32.totalorder %s237_s3, %s160_s5  ;;  %p164_p0 = scmp.lt.u32.totalorder %s160_s5, %s237_s3 }
 0x158   :  { %p166_p1 = pnand %p164_p0, %p161_p13 }
 0x15a   :  { %169 = shalt.err (!%p166_p1)
}
 0x15b   :  { %112 = dma.vmem_to_hbm [thread:$0]  %s107_s1, 512, %s237_s3, [#allocation4], %s175_s22, %s175_s22, %s176_s23  }
 0x15c   :  { %172 = dma.done.wait [#allocation4], 512  }
 0x15d   :  { %173 = vsyncadd [#allocation4], 4294966784 }
 0x15e   :  { %116 = vsyncpa [#allocation3], 1 }
 0x15f   :  { %117 = vsyncpa [#allocation4], 1 }

</bundles_post_ra>
